<compile_context>
chip_gen: v7x
topology: tpu7x:2x2x1
jax: 0.10.0
libtpu: 0.0.40
codegen_flags: <defaults>
</compile_context>

<pallas_src>
import functools

import jax
import jax.numpy as jnp
from jax import lax
from jax.experimental import pallas as pl
from jax.experimental.pallas import tpu as pltpu


def _round_up(x, m):
    return ((x + m - 1) // m) * m


def _kmeans_step_kernel(x_ref, c_ref, hcsq_ref, ck1_ref, cnt_ref, *,
                        block_n, k_pad, tiles_per_split, n_valid,
                        mask_rows, distance_in_bf16):
    s = pl.program_id(0)          # parallel split (TensorCores on v7x)
    i = pl.program_id(1)          # reduction over point tiles

    @pl.when(i == 0)
    def _():
        ck1_ref[...] = jnp.zeros_like(ck1_ref)
        cnt_ref[...] = jnp.zeros_like(cnt_ref)

    x = x_ref[...]                                   # (block_n, D_pad) f32
    c = c_ref[...]                                   # (k_pad, D_pad)  f32

    # Distance surrogate: 0.5*||c||^2 - x.c  (argmin + ties preserved exactly).
    if distance_in_bf16:
        xc = lax.dot_general(x.astype(jnp.bfloat16), c.astype(jnp.bfloat16),
                             dimension_numbers=(((1,), (1,)), ((), ())),
                             preferred_element_type=jnp.float32)
    else:
        xc = lax.dot_general(x, c,
                             dimension_numbers=(((1,), (1,)), ((), ())),
                             preferred_element_type=jnp.float32)  # (bn, k_pad)
    dist = hcsq_ref[...] - xc                                     # (bn, k_pad)

    # First-occurrence argmin over clusters, kept 2D (lane axis = clusters).
    ids = lax.broadcasted_iota(jnp.int32, (block_n, k_pad), 1)
    dmin = jnp.min(dist, axis=1, keepdims=True)                   # (bn, 1)
    idx = jnp.min(jnp.where(dist <= dmin, ids, k_pad),
                  axis=1, keepdims=True)                          # (bn, 1)
    onehot = (ids == idx).astype(jnp.float32)                     # (bn, k_pad)

    if mask_rows:  # drop rows that only exist because N was padded
        tile_start = (s * tiles_per_split + i) * block_n
        row = lax.broadcasted_iota(jnp.int32, (block_n, 1), 0) + tile_start
        onehot = jnp.where(row < n_valid, onehot, 0.0)

    # One-hot scatter on the MXU (no explicit transpose), accumulated directly
    # into the VMEM-resident output block; counts accumulated in int32 (exact).
    ck1_ref[...] += lax.dot_general(onehot, x,
                                    dimension_numbers=(((0,), (0,)), ((), ())),
                                    preferred_element_type=jnp.float32)
    cnt_ref[...] += jnp.sum(onehot, axis=0, keepdims=True).astype(jnp.int32)


def kmean_cluster_step(locF, Ck, *, block_n=None, num_splits=1,
                       distance_in_bf16=False, vmem_limit_bytes=None):
    """Pallas implementation of kMeanClusterStep.forward.

    locF: (N, 1, D) float32
    Ck:   (1, k, D) float32
    returns (Ck1: (1, k, D) float32, nItems: (1, k) int32)
    """
    N, _, D = locF.shape
    k = Ck.shape[1]
    x = locF.reshape(N, D).astype(jnp.float32)
    c = Ck.reshape(k, D).astype(jnp.float32)

    # Lane-dense padding: clusters and features to multiples of 128.
    k_pad = _round_up(max(k, 128), 128)
    D_pad = _round_up(max(D, 128), 128)

    # Hoist centroid-side constants out of the grid loop; padded clusters get a
    # huge half-norm so they never win the argmin.
    half_c_sq = 0.5 * jnp.sum(c * c, axis=1)                      # (k,)
    half_c_sq = jnp.pad(half_c_sq, (0, k_pad - k), constant_values=1e30)
    half_c_sq = half_c_sq.reshape(1, k_pad)
    c_p = jnp.pad(c, ((0, k_pad - k), (0, D_pad - D)))

    S = max(1, int(num_splits))

    if block_n is None:
        # HBM-streaming bound on x: pick the largest row tile such that the
        # double-buffered x tile + centroids + resident (k_pad, D_pad) output
        # accumulator stays well under ~24 MiB (headroom for v7x's 64 MiB VMEM).
        budget = 24 * 1024 * 1024
        fixed = 3 * k_pad * D_pad * 4 + 16 * k_pad   # c (x2) + acc + norms/counts
        avail = max(budget - fixed, 1 << 20)
        bn = avail // (2 * D_pad * 4)                # double-buffered x tile
        block_n = int(min(1024, max(128, (bn // 128) * 128)))
    # No more rows per tile than needed per split; keep sublane alignment.
    block_n = min(block_n, _round_up(pl.cdiv(N, S), 8))
    block_n = max(8, (block_n // 8) * 8)

    tiles_per_split = pl.cdiv(pl.cdiv(N, block_n), S)
    N_pad = S * tiles_per_split * block_n
    x_p = jnp.pad(x, ((0, N_pad - N), (0, D_pad - D)))

    kernel = functools.partial(
        _kmeans_step_kernel,
        block_n=block_n, k_pad=k_pad, tiles_per_split=tiles_per_split,
        n_valid=N, mask_rows=(N_pad != N), distance_in_bf16=distance_in_bf16)

    ck1_p, cnt_p = pl.pallas_call(
        kernel,
        out_shape=(
            jax.ShapeDtypeStruct((S, k_pad, D_pad), jnp.float32),
            jax.ShapeDtypeStruct((S, 1, k_pad), jnp.int32),
        ),
        grid_spec=pltpu.PrefetchScalarGridSpec(
            num_scalar_prefetch=0,
            grid=(S, tiles_per_split),
            in_specs=[
                pl.BlockSpec((block_n, D_pad),
                             lambda s, i: (s * tiles_per_split + i, 0)),
                pl.BlockSpec((k_pad, D_pad), lambda s, i: (0, 0)),
                pl.BlockSpec((1, k_pad), lambda s, i: (0, 0)),
            ],
            out_specs=(
                pl.BlockSpec((None, k_pad, D_pad), lambda s, i: (s, 0, 0)),
                pl.BlockSpec((None, 1, k_pad), lambda s, i: (s, 0, 0)),
            ),
        ),
        compiler_params=pltpu.CompilerParams(
            dimension_semantics=("parallel", "arbitrary"),
            vmem_limit_bytes=vmem_limit_bytes,
        ),
    )(x_p, c_p, half_c_sq)

    ck1 = jnp.sum(ck1_p, axis=0)[:k, :D].reshape(1, k, D)
    nitems = jnp.sum(cnt_p, axis=0)[:, :k]
    return ck1, nitems


def _reference(locF, Ck):
    """Plain-JAX reference matching the PyTorch forward."""
    N, _, D = locF.shape
    k = Ck.shape[1]
    dist = jnp.mean((locF - Ck) ** 2, axis=2)            # (N, k)
    idx = jnp.argmin(dist, axis=1)                       # (N,)
    onehot = jax.nn.one_hot(idx, k, dtype=jnp.float32)   # (N, k)
    ck1 = (onehot.T @ locF[:, 0, :]).reshape(1, k, D)
    nitems = onehot.sum(axis=0).astype(jnp.int32).reshape(1, k)
    return ck1, nitems


if __name__ == "__main__":
    # Small deterministic example: N points of dim D, k clusters.
    N, k, D = 64, 8, 32
    key = jax.random.PRNGKey(0)
    k_x, k_c = jax.random.split(key)

    locF = jax.random.normal(k_x, (N, 1, D), dtype=jnp.float32)
    # Module __init__ registers Ck as zeros(1, k, D); use nonzero Ck here so
    # the assignment step is actually exercised.
    Ck = jax.random.normal(k_c, (1, k, D), dtype=jnp.float32)

    ck1_ref, nitems_ref = _reference(locF, Ck)

    # default path, 2-way TensorCore split path, and N-padding (masked rows) path
    for kwargs in ({}, {"num_splits": 2}, {"block_n": 48}):
        ck1, nitems = kmean_cluster_step(locF, Ck, **kwargs)
        ck1 = jax.block_until_ready(ck1)
        nitems = jax.block_until_ready(nitems)
        assert ck1.shape == (1, k, D) and nitems.shape == (1, k)
        assert jnp.allclose(ck1, ck1_ref, rtol=1e-5, atol=1e-5), kwargs
        assert jnp.array_equal(nitems, nitems_ref), kwargs

    print("KERNEL_OK")
</pallas_src>

<mosaic_0001>
module attributes {stable_mosaic.version = 11 : i64} {
  func.func @_kmeans_step_kernel(%arg0: i32, %arg1: i32, %arg2: memref<64x128xf32, #tpu.memory_space<vmem>>, %arg3: memref<128x128xf32, #tpu.memory_space<vmem>>, %arg4: memref<1x128xf32, #tpu.memory_space<vmem>>, %arg5: memref<1x128x128xf32, #tpu.memory_space<vmem>>, %arg6: memref<1x1x128xi32, #tpu.memory_space<vmem>>) attributes {dimension_semantics = [#tpu.dimension_semantics<parallel>, #tpu.dimension_semantics<arbitrary>], iteration_bounds = array<i64: 1, 1>, scalar_prefetch = 0 : i64, scratch_operands = 0 : i64, tpu.core_type = #tpu.core_type<tc>, window_params = [{transform_indices = @transform_0, window_bounds = array<i64: 64, 128>}, {pipeline_mode = #tpu.pipeline_mode<synchronous>, transform_indices = @transform_1, window_bounds = array<i64: 128, 128>}, {pipeline_mode = #tpu.pipeline_mode<synchronous>, transform_indices = @transform_2, window_bounds = array<i64: 1, 128>}, {transform_indices = @transform_3, window_bounds = array<i64: 1, 128, 128>}, {transform_indices = @transform_4, window_bounds = array<i64: 1, 1, 128>}]} {
    %c0_i32 = arith.constant 0 : i32
    %0 = arith.cmpi eq, %arg1, %c0_i32 : i32
    %1 = arith.extui %0 : i1 to i32
    %c0_i32_0 = arith.constant 0 : i32
    %2 = arith.cmpi ne, %1, %c0_i32_0 : i32
    scf.if %2 {
      %cst_22 = arith.constant 0.000000e+00 : f32
      %38 = vector.broadcast %cst_22 : f32 to vector<128x128xf32>
      %c0_23 = arith.constant 0 : index
      %c0_24 = arith.constant 0 : index
      %c0_25 = arith.constant 0 : index
      %39 = vector.load %arg5[%c0_23, %c0_24, %c0_25] : memref<1x128x128xf32, #tpu.memory_space<vmem>>, vector<1x128x128xf32>
      %40 = vector.shape_cast %39 : vector<1x128x128xf32> to vector<128x128xf32>
      %41 = vector.shape_cast %38 : vector<128x128xf32> to vector<1x128x128xf32>
      tpu.vector_store %arg5[%c0_23, %c0_24, %c0_25], %41 {strides = array<i32>} : memref<1x128x128xf32, #tpu.memory_space<vmem>>, vector<1x128x128xf32>,
      %c0_i32_26 = arith.constant 0 : i32
      %42 = vector.broadcast %c0_i32_26 : i32 to vector<1x128xi32>
      %c0_27 = arith.constant 0 : index
      %c0_28 = arith.constant 0 : index
      %c0_29 = arith.constant 0 : index
      %43 = vector.load %arg6[%c0_27, %c0_28, %c0_29] : memref<1x1x128xi32, #tpu.memory_space<vmem>>, vector<1x1x128xi32>
      %44 = vector.shape_cast %43 : vector<1x1x128xi32> to vector<1x128xi32>
      %45 = vector.shape_cast %42 : vector<1x128xi32> to vector<1x1x128xi32>
      tpu.vector_store %arg6[%c0_27, %c0_28, %c0_29], %45 {strides = array<i32>} : memref<1x1x128xi32, #tpu.memory_space<vmem>>, vector<1x1x128xi32>,
    } else {
    }
    %c0 = arith.constant 0 : index
    %c0_1 = arith.constant 0 : index
    %3 = vector.load %arg2[%c0, %c0_1] : memref<64x128xf32, #tpu.memory_space<vmem>>, vector<64x128xf32>
    %c0_2 = arith.constant 0 : index
    %c0_3 = arith.constant 0 : index
    %4 = vector.load %arg3[%c0_2, %c0_3] : memref<128x128xf32, #tpu.memory_space<vmem>>, vector<128x128xf32>
    %cst = arith.constant dense<0.000000e+00> : vector<64x128xf32>
    %5 = tpu.matmul %3, %4, %cst {dimension_numbers = #tpu.dot_dimension_numbers<[1], [1], [0], [0], [0, 0, 1, 0], [], []>} : vector<64x128xf32>, vector<128x128xf32>, vector<64x128xf32> -> vector<64x128xf32>
    %c0_4 = arith.constant 0 : index
    %c0_5 = arith.constant 0 : index
    %6 = vector.load %arg4[%c0_4, %c0_5] : memref<1x128xf32, #tpu.memory_space<vmem>>, vector<1x128xf32>
    %7 = vector.broadcast %6 : vector<1x128xf32> to vector<64x128xf32>
    %8 = arith.subf %7, %5 : vector<64x128xf32>
    %9 = tpu.iota {dimensions = array<i32: 1>} : vector<64x128xi32>
    %cst_6 = arith.constant dense<0x7F800000> : vector<64xf32>
    %10 = vector.multi_reduction <minimumf>, %8, %cst_6 [1] : vector<64x128xf32> to vector<64xf32>
    %11 = vector.shape_cast %10 : vector<64xf32> to vector<64x1xf32>
    %12 = vector.broadcast %11 : vector<64x1xf32> to vector<64x128xf32>
    %13 = arith.cmpf ole, %8, %12 : vector<64x128xf32>
    %c128_i32 = arith.constant 128 : i32
    %14 = vector.broadcast %c128_i32 : i32 to vector<64x128xi32>
    %15 = arith.select %13, %9, %14 : vector<64x128xi1>, vector<64x128xi32>
    %cst_7 = arith.constant dense<2147483647> : vector<64xi32>
    %16 = vector.multi_reduction <minsi>, %15, %cst_7 [1] : vector<64x128xi32> to vector<64xi32>
    %17 = vector.shape_cast %16 : vector<64xi32> to vector<64x1xi32>
    %18 = vector.broadcast %17 : vector<64x1xi32> to vector<64x128xi32>
    %19 = arith.cmpi eq, %9, %18 : vector<64x128xi32>
    %20 = arith.extui %19 : vector<64x128xi1> to vector<64x128xi32>
    %21 = arith.sitofp %20 : vector<64x128xi32> to vector<64x128xf32>
    %c0_8 = arith.constant 0 : index
    %c0_9 = arith.constant 0 : index
    %c0_10 = arith.constant 0 : index
    %22 = vector.load %arg5[%c0_8, %c0_9, %c0_10] : memref<1x128x128xf32, #tpu.memory_space<vmem>>, vector<1x128x128xf32>
    %23 = vector.shape_cast %22 : vector<1x128x128xf32> to vector<128x128xf32>
    %cst_11 = arith.constant dense<0.000000e+00> : vector<128x128xf32>
    %24 = tpu.matmul %21, %3, %cst_11 {dimension_numbers = #tpu.dot_dimension_numbers<[0], [0], [1], [1], [0, 1, 1, 1], [], []>} : vector<64x128xf32>, vector<64x128xf32>, vector<128x128xf32> -> vector<128x128xf32>
    %25 = arith.addf %23, %24 : vector<128x128xf32>
    %c0_12 = arith.constant 0 : index
    %c0_13 = arith.constant 0 : index
    %c0_14 = arith.constant 0 : index
    %26 = vector.load %arg5[%c0_12, %c0_13, %c0_14] : memref<1x128x128xf32, #tpu.memory_space<vmem>>, vector<1x128x128xf32>
    %27 = vector.shape_cast %26 : vector<1x128x128xf32> to vector<128x128xf32>
    %28 = vector.shape_cast %25 : vector<128x128xf32> to vector<1x128x128xf32>
    tpu.vector_store %arg5[%c0_12, %c0_13, %c0_14], %28 {strides = array<i32>} : memref<1x128x128xf32, #tpu.memory_space<vmem>>, vector<1x128x128xf32>,
    %c0_15 = arith.constant 0 : index
    %c0_16 = arith.constant 0 : index
    %c0_17 = arith.constant 0 : index
    %29 = vector.load %arg6[%c0_15, %c0_16, %c0_17] : memref<1x1x128xi32, #tpu.memory_space<vmem>>, vector<1x1x128xi32>
    %30 = vector.shape_cast %29 : vector<1x1x128xi32> to vector<1x128xi32>
    %cst_18 = arith.constant dense<0.000000e+00> : vector<128xf32>
    %31 = vector.multi_reduction <add>, %21, %cst_18 [0] : vector<64x128xf32> to vector<128xf32>
    %32 = vector.shape_cast %31 : vector<128xf32> to vector<1x128xf32>
    %33 = arith.fptosi %32 : vector<1x128xf32> to vector<1x128xi32>
    %34 = arith.addi %30, %33 : vector<1x128xi32>
    %c0_19 = arith.constant 0 : index
    %c0_20 = arith.constant 0 : index
    %c0_21 = arith.constant 0 : index
    %35 = vector.load %arg6[%c0_19, %c0_20, %c0_21] : memref<1x1x128xi32, #tpu.memory_space<vmem>>, vector<1x1x128xi32>
    %36 = vector.shape_cast %35 : vector<1x1x128xi32> to vector<1x128xi32>
    %37 = vector.shape_cast %34 : vector<1x128xi32> to vector<1x1x128xi32>
    tpu.vector_store %arg6[%c0_19, %c0_20, %c0_21], %37 {strides = array<i32>} : memref<1x1x128xi32, #tpu.memory_space<vmem>>, vector<1x1x128xi32>,
    return
  }
  func.func @transform_0(%arg0: i32, %arg1: i32) -> (i32, i32) {
    %c1_i32 = arith.constant 1 : i32
    %0 = arith.muli %arg0, %c1_i32 : i32
    %1 = arith.addi %0, %arg1 : i32
    %c0_i32 = arith.constant 0 : i32
    %c0_i32_0 = arith.constant 0 : i32
    return %1, %c0_i32 : i32, i32
  }
  func.func @transform_1(%arg0: i32, %arg1: i32) -> (i32, i32) {
    %c0_i32 = arith.constant 0 : i32
    %c0_i32_0 = arith.constant 0 : i32
    %c0_i32_1 = arith.constant 0 : i32
    return %c0_i32, %c0_i32_0 : i32, i32
  }
  func.func @transform_2(%arg0: i32, %arg1: i32) -> (i32, i32) {
    %c0_i32 = arith.constant 0 : i32
    %c0_i32_0 = arith.constant 0 : i32
    %c0_i32_1 = arith.constant 0 : i32
    return %c0_i32, %c0_i32_0 : i32, i32
  }
  func.func @transform_3(%arg0: i32, %arg1: i32) -> (i32, i32, i32) {
    %c0_i32 = arith.constant 0 : i32
    %c0_i32_0 = arith.constant 0 : i32
    %c0_i32_1 = arith.constant 0 : i32
    return %arg0, %c0_i32, %c0_i32_0 : i32, i32, i32
  }
  func.func @transform_4(%arg0: i32, %arg1: i32) -> (i32, i32, i32) {
    %c0_i32 = arith.constant 0 : i32
    %c0_i32_0 = arith.constant 0 : i32
    %c0_i32_1 = arith.constant 0 : i32
    return %arg0, %c0_i32, %c0_i32_0 : i32, i32, i32
  }
}

</mosaic_0001>

<bundles_post_ra>
// kernel: tpu_custom_call.1
= control target key start
LH: loop header
LB: loop body
LE: loop exit
PB: predicated region body
PF: predicated region fallthrough
CT: control target
= control target key end

     0   :  { %10 = vsyncpa [#allocation3], 0  ;;  %s1188_s0 = inlined_call_operand.hbm [shape: f32[64,128], index: 0, kind: input, shape index: {}]   ;;  %s1189_s1 = inlined_call_operand.hbm [shape: f32[128,128], index: 1, kind: input, shape index: {}]   ;;  %s1190_s2 = inlined_call_operand.vmem [shape: f32[1,128], index: 2, kind: input, shape index: {}]   ;;  %s1191_s3 = inlined_call_operand.hbm [shape: f32[1,128,128], index: 3, kind: output, shape index: {0}]   ;;  %s1192_s4 = inlined_call_operand.hbm [shape: s32[1,1,128], index: 4, kind: output, shape index: {1}]  }
   0x1   :  { %11 = vsyncpa [#allocation6], 0 }
   0x2   :  { %12 = vsyncpa [#allocation4], 0 }
   0x3   :  { %13 = vsyncpa [#allocation9], 0  ;;  %s1021_s15 = smov [#allocation2]   ;;  %s925_s19 = scalar_lea.hbm %s1188_s0, 1024 }
   0x4   :  { %s23_s16 = sshll.u32 %s1021_s15, 4  ;;  %p926_p0 = scmp.ne.s32.totalorder %s1188_s0, %s925_s19  ;;  %s24_s16 = int_to_ptr.vmem [resolvable:$true] %s23_s16 }
   0x5   :  { %p929_p1 = scmp.lt.u32.totalorder %s925_s19, %s1188_s0 }
   0x7   :  { %p931_p2 = pnand %p929_p1, %p926_p0 }
   0x9   :  { %934 = shalt.err (!%p931_p2)
}
   0xa   :  { %s935_s24 = scalar_lea.vmem %s24_s16, 1024  ;;  %p940_p4 = scmp.lt.s32.totalorder %s24_s16, %s24_s16 }
   0xb   :  { %p936_p3 = scmp.ne.s32.totalorder %s24_s16, %s935_s24  ;;  %p941_p5 = scmp.lt.s32.totalorder %s935_s24, %s935_s24 }
   0xd   :  { %p942_p6 = por %p941_p5, %p940_p4 }
   0xf   :  { %p943_p7 = pnand %p942_p6, %p936_p3 }
  0x11   :  { %946 = shalt.err (!%p943_p7)
}
  0x12   :  { %s1022_s25 = smov 128   ;;  %s1023_s26 = smov 8  }
  0x13   :  { %29 = dma.hbm_to_vmem [thread:$0]  %s1188_s0, 1024, %s24_s16, [#allocation3], %s1022_s25, %s1022_s25, %s1023_s26  }
  0x14   :  { %s1024_s29 = smov [#allocation5]   ;;  %s947_s7 = scalar_lea.hbm %s1189_s1, 2048 }
  0x15   :  { %s35_s30 = sshll.u32 %s1024_s29, 4  ;;  %p948_p8 = scmp.ne.s32.totalorder %s1189_s1, %s947_s7  ;;  %s36_s30 = int_to_ptr.vmem [resolvable:$true] %s35_s30 }
  0x16   :  { %p951_p9 = scmp.lt.u32.totalorder %s947_s7, %s1189_s1 }
  0x18   :  { %p953_p10 = pnand %p951_p9, %p948_p8 }
  0x1a   :  { %956 = shalt.err (!%p953_p10)
}
  0x1b   :  { %s957_s12 = scalar_lea.vmem %s36_s30, 2048  ;;  %p962_p12 = scmp.lt.s32.totalorder %s36_s30, %s36_s30 }
  0x1c   :  { %p958_p11 = scmp.ne.s32.totalorder %s36_s30, %s957_s12  ;;  %p963_p13 = scmp.lt.s32.totalorder %s957_s12, %s957_s12 }
  0x1e   :  { %p964_p0 = por %p963_p13, %p962_p12 }
  0x20   :  { %p965_p1 = pnand %p964_p0, %p958_p11 }
  0x22   :  { %968 = shalt.err (!%p965_p1)
}
  0x23   :  { %41 = dma.hbm_to_vmem [thread:$0]  %s1189_s1, 2048, %s36_s30, [#allocation6], %s1022_s25, %s1022_s25, %s1023_s26  }
  0x24   :  { %1013 = dma.done.wait [#allocation3], 1024  }
  0x25   :  { %1014 = vsyncadd [#allocation3], 4294966272 }
  0x26   :  { %1015 = dma.done.wait [#allocation6], 2048  }
  0x27   :  { %1016 = vsyncadd [#allocation6], 4294965248  ;;  %v81_v0 = vld [vmem:[#allocation5] sm:$0xff]  ;;  %v82_v1 = vld [vmem:[#allocation5 + $0x8] sm:$0xff]  ;;  %v217_v50 = vlaneseq }
  0x28   :  { %v83_v2 = vld [vmem:[#allocation5 + $0x10] sm:$0xff]  ;;  %v867_v3 = vpack.c.bf16 %v82_v1, %v81_v0  ;;  %v84_v4 = vld [vmem:[#allocation5 + $0x18] sm:$0xff]  ;;  %v85_v6 = vld [vmem:[#allocation5 + $0x20] sm:$0xff] }
  0x29   :  { %v871_v5 = vpack.c.bf16 %v84_v4, %v83_v2  ;;  %v1084_v7 = vld [vmem:[#allocation2] sm:$0xff]  ;;  %v86_v8 = vld [vmem:[#allocation5 + $0x28] sm:$0xff]  ;;  %v75_v9 = vld [vmem:[#allocation2 + $0x10] sm:$0xff]  ;;  %v1107_v51 = vand.u32 127, %v217_v50 }
  0x2a   :  { %868 = vmatprep.subr.bf16.mxu0 %v867_v3  ;;  %815 = vmatprep.mubr.f32.mxu0 %v1084_v7  ;;  %v76_v10 = vld [vmem:[#allocation2 + $0x18] sm:$0xff]  ;;  %v875_v12 = vpack.c.bf16 %v86_v8, %v85_v6  ;;  %v87_v13 = vld [vmem:[#allocation5 + $0x30] sm:$0xff]  ;;  %v89_v16 = vld [vmem:[#allocation5 + $0x40] sm:$0xff] }
  0x2b   :  { %870 = vmatpush3.bf16.xpose.msra.mxu0 %v867_v3  ;;  %v1087_v11 = vpack.c.bf16 %v76_v10, %v75_v9  ;;  %v88_v14 = vld [vmem:[#allocation5 + $0x38] sm:$0xff]  ;;  %v90_v17 = vld [vmem:[#allocation5 + $0x48] sm:$0xff]  ;;  %v91_v19 = vld [vmem:[#allocation5 + $0x50] sm:$0xff] }
  0x2c   :  { %872 = vmatprep.subr.bf16.mxu0 %v871_v5  ;;  %v879_v15 = vpack.c.bf16 %v88_v14, %v87_v13  ;;  %v883_v18 = vpack.c.bf16 %v90_v17, %v89_v16  ;;  %v92_v20 = vld [vmem:[#allocation5 + $0x58] sm:$0xff]  ;;  %v93_v22 = vld [vmem:[#allocation5 + $0x60] sm:$0xff]  ;;  %v94_v23 = vld [vmem:[#allocation5 + $0x68] sm:$0xff] }
  0x2d   :  { %v887_v21 = vpack.c.bf16 %v92_v20, %v91_v19  ;;  %v891_v24 = vpack.c.bf16 %v94_v23, %v93_v22  ;;  %v95_v25 = vld [vmem:[#allocation5 + $0x70] sm:$0xff]  ;;  %v96_v26 = vld [vmem:[#allocation5 + $0x78] sm:$0xff]  ;;  %v1089_v28 = vld [vmem:[#allocation2 + $0x8] sm:$0xff] }
  0x2e   :  { %v895_v27 = vpack.c.bf16 %v96_v26, %v95_v25  ;;  %v1092_v29 = vld [vmem:[#allocation2 + $0x20] sm:$0xff]  ;;  %v1095_v30 = vld [vmem:[#allocation2 + $0x28] sm:$0xff]  ;;  %v1097_v31 = vld [vmem:[#allocation2 + $0x30] sm:$0xff] }
  0x2f   :  { %v1101_v32 = vld [vmem:[#allocation2 + $0x38] sm:$0xff]  ;;  %v710_v33 = vld [vmem:[%s1190_s2] ss:$0 sm:$0xff]  ;;  %s1027_s2 = smov [#allocation8]  }
  0x30   :  { %s696_s15 = sshll.u32 %s1027_s2, 4  ;;  %s697_s15 = int_to_ptr.vmem [resolvable:$true] %s696_s15 }
  0x31   :  { %s969_s16 = scalar_lea.vmem %s697_s15, 16  ;;  %s973_s17 = scalar_lea.vmem %s697_s15, 32 }
  0x32   :  { %p970_p2 = scmp.ne.s32.totalorder %s697_s15, %s969_s16  ;;  %p974_p3 = scmp.lt.s32.totalorder %s697_s15, %s697_s15 }
  0x33   :  { %874 = vmatpush3.bf16.xpose.msra.mxu0 %v871_v5  ;;  %p975_p4 = scmp.lt.s32.totalorder %s973_s17, %s969_s16 }
  0x34   :  { %876 = vmatprep.subr.bf16.mxu0 %v875_v12 }
  0x35   :  { %p976_p5 = por %p975_p4, %p974_p3 }
  0x37   :  { %p977_p6 = pnand %p976_p5, %p970_p2 }
  0x3b   :  { %878 = vmatpush3.bf16.xpose.msra.mxu0 %v875_v12 }
  0x3c   :  { %880 = vmatprep.subr.bf16.mxu0 %v879_v15 }
  0x43   :  { %882 = vmatpush3.bf16.xpose.msra.mxu0 %v879_v15 }
  0x44   :  { %884 = vmatprep.subr.bf16.mxu0 %v883_v18 }
  0x4b   :  { %886 = vmatpush3.bf16.xpose.msra.mxu0 %v883_v18 }
  0x4c   :  { %888 = vmatprep.subr.bf16.mxu0 %v887_v21 }
  0x53   :  { %890 = vmatpush3.bf16.xpose.msra.mxu0 %v887_v21 }
  0x54   :  { %892 = vmatprep.subr.bf16.mxu0 %v891_v24 }
  0x5b   :  { %894 = vmatpush3.bf16.xpose.msra.mxu0 %v891_v24 }
  0x5c   :  { %896 = vmatprep.subr.bf16.mxu0 %v895_v27 }
  0x63   :  { %898 = vmatpush3.bf16.xpose.msra.mxu0 %v895_v27 }
  0x6a   :  { %816 = vmatmul.mubr.f32.vlgmr.msra.gmra.mrb[0].mxu0 %v1089_v28 }
  0x6b   :  { %818 = vmatprep.mubr.f32.mxu0 %v75_v9 }
  0x6e   :  { %819 = vmatmul.mubr.f32.gmra.mrb[2].mxu0 %v76_v10 }
  0x6f   :  { %821 = vmatprep.mubr.f32.mxu0 %v1092_v29 }
  0x72   :  { %822 = vmatmul.mubr.f32.gmra.mrb[4].mxu0 %v1095_v30 }
  0x73   :  { %824 = vmatprep.mubr.f32.mxu0 %v1097_v31 }
  0x76   :  { %825 = vmatmul.mubr.f32.gmra.mrb[6].mxu0 %v1101_v32 }
 0x13d   :  { %v817_v34 = vpop.f32.mrb[0].mxu0 }
 0x13e   :  { %v163_v35 = vpop.f32.mrb[1].mxu0  ;;  %v210_v39 = vsub.f32 %v710_v33, %v817_v34 }
 0x13f   :  { %v209_v36 = vsub.f32 %v710_v33, %v163_v35 }
 0x141   :  { %219 = vmin.xlane.f32.xlu0 %v209_v36  ;;  %v820_v37 = vpop.f32.mrb[2].mxu0 }
 0x142   :  { %v173_v38 = vpop.f32.mrb[3].mxu0  ;;  %v212_v41 = vsub.f32 %v710_v33, %v820_v37 }
 0x143   :  { %v211_v40 = vsub.f32 %v710_v33, %v173_v38 }
 0x145   :  { %221 = vmin.xlane.f32.xlu0 %v210_v39  ;;  %223 = vmin.xlane.f32.xlu1 %v211_v40  ;;  %v823_v42 = vpop.f32.mrb[4].mxu0 }
 0x146   :  { %v183_v43 = vpop.f32.mrb[5].mxu0  ;;  %v214_v45 = vsub.f32 %v710_v33, %v823_v42 }
 0x147   :  { %v213_v44 = vsub.f32 %v710_v33, %v183_v43 }
 0x149   :  { %225 = vmin.xlane.f32.xlu1 %v212_v41  ;;  %227 = vmin.xlane.f32.xlu0 %v213_v44  ;;  %v826_v46 = vpop.f32.mrb[6].mxu0 }
 0x14a   :  { %v193_v47 = vpop.f32.mrb[7].mxu0  ;;  %v216_v49 = vsub.f32 %v710_v33, %v826_v46 }
 0x14b   :  { %v215_v48 = vsub.f32 %v710_v33, %v193_v47 }
 0x14d   :  { %229 = vmin.xlane.f32.xlu1 %v214_v45  ;;  %231 = vmin.xlane.f32.xlu0 %v215_v48 }
 0x151   :  { %233 = vmin.xlane.f32.xlu1 %v216_v49 }
 0x1ce   :  { %v220_v52 = vpop.xlane.xlu0 %219 }
 0x1cf   :  { %vm235_vm0 = vcmp.le.f32.partialorder %v209_v36, %v220_v52 }
 0x1d0   :  { %v243_v53 = vsel %vm235_vm0, %v1107_v51, 128 }
 0x1d1   :  { %v252_v54 = vshra.s32 %v243_v53, 16  ;;  %v251_v22 = vand.u32 65535, %v243_v53 }
 0x1d2   :  { %v222_v55 = vpop.xlane.xlu0 %221  ;;  %v224_v56 = vpop.xlane.xlu1 %223 }
 0x1d3   :  { %vm236_vm1 = vcmp.le.f32.partialorder %v210_v39, %v222_v55  ;;  %vm237_vm2 = vcmp.le.f32.partialorder %v211_v40, %v224_v56  ;;  %v254_v57 = vcvt.s32.f32 %v252_v54  ;;  %v253_v26 = vcvt.s32.f32 %v251_v22 }
 0x1d4   :  { %v244_v58 = vsel %vm236_vm1, %v1107_v51, 128  ;;  %v245_v59 = vsel %vm237_vm2, %v1107_v51, 128 }
 0x1d5   :  { %255 = vmin.xlane.f32.xlu0 %v254_v57  ;;  %v266_v60 = vshra.s32 %v244_v58, 16  ;;  %v280_v61 = vshra.s32 %v245_v59, 16  ;;  %v265_v23 = vand.u32 65535, %v244_v58  ;;  %v279_v24 = vand.u32 65535, %v245_v59 }
 0x1d6   :  { %v226_v62 = vpop.xlane.xlu1 %225  ;;  %v228_v63 = vpop.xlane.xlu0 %227 }
 0x1d7   :  { %vm238_vm3 = vcmp.le.f32.partialorder %v212_v41, %v226_v62  ;;  %vm239_vm4 = vcmp.le.f32.partialorder %v213_v44, %v228_v63  ;;  %v268_v0 = vcvt.s32.f32 %v266_v60  ;;  %v282_v1 = vcvt.s32.f32 %v280_v61 }
 0x1d8   :  { %v246_v2 = vsel %vm238_vm3, %v1107_v51, 128  ;;  %v247_v3 = vsel %vm239_vm4, %v1107_v51, 128  ;;  %v267_v37 = vcvt.s32.f32 %v265_v23  ;;  %v281_v38 = vcvt.s32.f32 %v279_v24 }
 0x1d9   :  { %269 = vmin.xlane.f32.xlu1 %v268_v0  ;;  %283 = vmin.xlane.f32.xlu0 %v282_v1  ;;  %v294_v4 = vshra.s32 %v246_v2, 16  ;;  %v308_v5 = vshra.s32 %v247_v3, 16  ;;  %v293_v33 = vand.u32 65535, %v246_v2  ;;  %v307_v34 = vand.u32 65535, %v247_v3 }
 0x1da   :  { %v230_v6 = vpop.xlane.xlu1 %229  ;;  %v232_v8 = vpop.xlane.xlu0 %231  ;;  %v1025_v60 = vmov 0   ;;  %v899_v61 = vpack.c.bf16 %v1089_v28, %v1084_v7  ;;  %v907_v62 = vpack.c.bf16 %v1095_v30, %v1092_v29  ;;  %v911_v63 = vpack.c.bf16 %v1101_v32, %v1097_v31 }
 0x1db   :  { %vm240_vm5 = vcmp.le.f32.partialorder %v214_v45, %v230_v6  ;;  %vm241_vm6 = vcmp.le.f32.partialorder %v215_v48, %v232_v8  ;;  %v296_v9 = vcvt.s32.f32 %v294_v4  ;;  %v310_v10 = vcvt.s32.f32 %v308_v5  ;;  %72 = vst [vmem:[#allocation8] sm:$0x1] %v1025_v60 }
 0x1dc   :  { %v248_v12 = vsel %vm240_vm5, %v1107_v51, 128  ;;  %v249_v13 = vsel %vm241_vm6, %v1107_v51, 128  ;;  %v295_v45 = vcvt.s32.f32 %v293_v33  ;;  %v309_v46 = vcvt.s32.f32 %v307_v34  ;;  %900 = vmatprep.subr.bf16.mxu1 %v899_v61 }
 0x1dd   :  { %297 = vmin.xlane.f32.xlu1 %v296_v9  ;;  %311 = vmin.xlane.f32.xlu0 %v310_v10  ;;  %v322_v14 = vshra.s32 %v248_v12, 16  ;;  %v336_v15 = vshra.s32 %v249_v13, 16  ;;  %v321_v41 = vand.u32 65535, %v248_v12  ;;  %v335_v42 = vand.u32 65535, %v249_v13 }
 0x1de   :  { %v234_v16 = vpop.xlane.xlu1 %233  ;;  %902 = vmatpush3.bf16.msra.mxu1 %v899_v61  ;;  %v1026_v31 = vmov 0.0  }
 0x1df   :  { %vm242_vm7 = vcmp.le.f32.partialorder %v216_v49, %v234_v16  ;;  %v324_v17 = vcvt.s32.f32 %v322_v14  ;;  %v338_v18 = vcvt.s32.f32 %v336_v15  ;;  %v323_v53 = vcvt.s32.f32 %v321_v41  ;;  %904 = vmatprep.subr.bf16.mxu1 %v1087_v11 }
 0x1e0   :  { %v250_v19 = vsel %vm242_vm7, %v1107_v51, 128  ;;  %v337_v54 = vcvt.s32.f32 %v335_v42 }
 0x1e1   :  { %325 = vmin.xlane.f32.xlu1 %v324_v17  ;;  %339 = vmin.xlane.f32.xlu0 %v338_v18  ;;  %v350_v20 = vshra.s32 %v250_v19, 16  ;;  %v349_v49 = vand.u32 65535, %v250_v19 }
 0x1e2   :  { %906 = vmatpush3.bf16.msra.mxu1 %v1087_v11 }
 0x1e3   :  { %v352_v21 = vcvt.s32.f32 %v350_v20  ;;  %v351_v58 = vcvt.s32.f32 %v349_v49  ;;  %908 = vmatprep.subr.bf16.mxu1 %v907_v62 }
 0x1e5   :  { %353 = vmin.xlane.f32.xlu1 %v352_v21 }
 0x1e6   :  { %910 = vmatpush3.bf16.msra.mxu1 %v907_v62 }
 0x1e7   :  { %912 = vmatprep.subr.bf16.mxu1 %v911_v63 }
 0x1ea   :  { %914 = vmatpush3.bf16.msra.mxu1 %v911_v63 }
 0x262   :  { %v256_v25 = vpop.xlane.xlu0 %255 }
 0x263   :  { %vm257_vm8 = vcmp.eq.f32.partialorder %v254_v57, %v256_v25 }
 0x264   :  { %v258_v27 = vsel %vm257_vm8, %v253_v26, inf  ;;  %vm435_vm8 = vcmask 523264  }
 0x265   :  { %259 = vmin.xlane.f32.xlu0 %v258_v27 }
 0x266   :  { %v270_v35 = vpop.xlane.xlu1 %269  ;;  %v284_v36 = vpop.xlane.xlu0 %283 }
 0x267   :  { %vm271_vm9 = vcmp.eq.f32.partialorder %v268_v0, %v270_v35  ;;  %vm285_vm10 = vcmp.eq.f32.partialorder %v282_v1, %v284_v36  ;;  %v262_v0 = vcvt.f32.s32 %v256_v25  ;;  %v276_v1 = vcvt.f32.s32 %v270_v35 }
 0x268   :  { %v272_v39 = vsel %vm271_vm9, %v267_v37, inf  ;;  %v286_v40 = vsel %vm285_vm10, %v281_v38, inf  ;;  %v290_v28 = vcvt.f32.s32 %v284_v36 }
 0x269   :  { %273 = vmin.xlane.f32.xlu1 %v272_v39  ;;  %287 = vmin.xlane.f32.xlu0 %v286_v40  ;;  %v263_v7 = vshll.u32 %v262_v0, 16  ;;  %v277_v5 = vshll.u32 %v276_v1, 16  ;;  %v661_v0 = vld [vmem:[#allocation8] sm:$0x1] }
 0x26a   :  { %v298_v43 = vpop.xlane.xlu1 %297  ;;  %v312_v44 = vpop.xlane.xlu0 %311  ;;  %v291_v11 = vshll.u32 %v290_v28, 16 }
 0x26b   :  { %vm299_vm11 = vcmp.eq.f32.partialorder %v296_v9, %v298_v43  ;;  %vm313_vm12 = vcmp.eq.f32.partialorder %v310_v10, %v312_v44  ;;  %v304_v29 = vcvt.f32.s32 %v298_v43  ;;  %v318_v30 = vcvt.f32.s32 %v312_v44 }
 0x26c   :  { %v300_v47 = vsel %vm299_vm11, %v295_v45, inf  ;;  %v314_v48 = vsel %vm313_vm12, %v309_v46, inf }
 0x26d   :  { %301 = vmin.xlane.f32.xlu1 %v300_v47  ;;  %315 = vmin.xlane.f32.xlu0 %v314_v48  ;;  %v305_v14 = vshll.u32 %v304_v29, 16  ;;  %v319_v15 = vshll.u32 %v318_v30, 16 }
 0x26e   :  { %v1117_v50 = vpop.xlane.xlu1 %325  ;;  %v1119_v52 = vpop.xlane.xlu0 %339 }
 0x26f   :  { %vm327_vm13 = vcmp.eq.f32.partialorder %v324_v17, %v1117_v50  ;;  %vm341_vm14 = vcmp.eq.f32.partialorder %v338_v18, %v1119_v52  ;;  %v332_v16 = vcvt.f32.s32 %v1117_v50  ;;  %v346_v17 = vcvt.f32.s32 %v1119_v52 }
 0x270   :  { %v328_v55 = vsel %vm327_vm13, %v323_v53, inf  ;;  %v342_v56 = vsel %vm341_vm14, %v337_v54, inf }
 0x271   :  { %329 = vmin.xlane.f32.xlu1 %v328_v55  ;;  %343 = vmin.xlane.f32.xlu0 %v342_v56  ;;  %v333_v26 = vshll.u32 %v332_v16, 16  ;;  %v347_v27 = vshll.u32 %v346_v17, 16 }
 0x272   :  { %v1123_v57 = vpop.xlane.xlu1 %353 }
 0x273   :  { %vm355_vm15 = vcmp.eq.f32.partialorder %v352_v21, %v1123_v57  ;;  %v360_v33 = vcvt.f32.s32 %v1123_v57 }
 0x274   :  { %v356_v59 = vsel %vm355_vm15, %v351_v58, inf }
 0x275   :  { %357 = vmin.xlane.f32.xlu1 %v356_v59  ;;  %v361_v44 = vshll.u32 %v360_v33, 16 }
 0x2f2   :  { %v260_v2 = vpop.xlane.xlu0 %259 }
 0x2f3   :  { %v261_v3 = vcvt.f32.s32 %v260_v2 }
 0x2f5   :  { %v264_v4 = vadd.s32 %v263_v7, %v261_v3 }
 0x2f6   :  { %v274_v6 = vpop.xlane.xlu1 %273  ;;  %v288_v8 = vpop.xlane.xlu0 %287 }
 0x2f7   :  { %v275_v9 = vcvt.f32.s32 %v274_v6  ;;  %v289_v10 = vcvt.f32.s32 %v288_v8  ;;  %vm363_vm0 = vcmp.eq.s32.totalorder %v1107_v51, %v264_v4 }
 0x2f8   :  { %v711_v32 = vsel %vm363_vm0, 1.0, %v1026_v31 }
 0x2f9   :  { %v278_v12 = vadd.s32 %v277_v5, %v275_v9  ;;  %v292_v13 = vadd.s32 %v291_v11, %v289_v10  ;;  %403 = vxpose.xlu0.b32.start [1/8] (short) %v711_v32, 128 }
 0x2fa   :  { %v302_v18 = vpop.xlane.xlu1 %301  ;;  %v316_v19 = vpop.xlane.xlu0 %315 }
 0x2fb   :  { %vm364_vm1 = vcmp.eq.s32.totalorder %v1107_v51, %v278_v12  ;;  %v303_v20 = vcvt.f32.s32 %v302_v18  ;;  %v317_v21 = vcvt.f32.s32 %v316_v19  ;;  %vm365_vm2 = vcmp.eq.s32.totalorder %v1107_v51, %v292_v13 }
 0x2fc   :  { %v712_v22 = vsel %vm364_vm1, 1.0, %v1026_v31  ;;  %v713_v36 = vsel %vm365_vm2, 1.0, %v1026_v31 }
 0x2fd   :  { %v662_v23 = vadd.f32 %v712_v22, %v711_v32  ;;  %v306_v24 = vadd.s32 %v305_v14, %v303_v20  ;;  %v320_v25 = vadd.s32 %v319_v15, %v317_v21  ;;  %404 = vxpose.xlu0.b32.cont [2/8] (short) %v712_v22, 128 }
 0x2fe   :  { %v330_v34 = vpop.xlane.xlu1 %329  ;;  %v344_v35 = vpop.xlane.xlu0 %343 }
 0x2ff   :  { %v331_v37 = vcvt.f32.s32 %v330_v34  ;;  %v345_v38 = vcvt.f32.s32 %v344_v35  ;;  %v663_v39 = vadd.f32 %v713_v36, %v662_v23  ;;  %vm366_vm3 = vcmp.eq.s32.totalorder %v1107_v51, %v306_v24 }
 0x300   :  { %v714_v40 = vsel %vm366_vm3, 1.0, %v1026_v31  ;;  %vm367_vm4 = vcmp.eq.s32.totalorder %v1107_v51, %v320_v25 }
 0x301   :  { %v334_v41 = vadd.s32 %v333_v26, %v331_v37  ;;  %v348_v42 = vadd.s32 %v347_v27, %v345_v38  ;;  %405 = vxpose.xlu0.b32.cont [3/8] (short) %v713_v36, 128  ;;  %v664_v43 = vadd.f32 %v714_v40, %v663_v39  ;;  %v715_v46 = vsel %vm367_vm4, 1.0, %v1026_v31 }
 0x302   :  { %v358_v45 = vpop.xlane.xlu1 %357 }
 0x303   :  { %v359_v47 = vcvt.f32.s32 %v358_v45  ;;  %v665_v48 = vadd.f32 %v715_v46, %v664_v43  ;;  %vm368_vm5 = vcmp.eq.s32.totalorder %v1107_v51, %v334_v41  ;;  %vm369_vm6 = vcmp.eq.s32.totalorder %v1107_v51, %v348_v42 }
 0x304   :  { %v716_v49 = vsel %vm368_vm5, 1.0, %v1026_v31  ;;  %v717_v53 = vsel %vm369_vm6, 1.0, %v1026_v31 }
 0x305   :  { %v362_v50 = vadd.s32 %v361_v44, %v359_v47  ;;  %406 = vxpose.xlu0.b32.cont [4/8] (short) %v714_v40, 128  ;;  %v666_v52 = vadd.f32 %v716_v49, %v665_v48 }
 0x307   :  { %v667_v54 = vadd.f32 %v717_v53, %v666_v52  ;;  %vm370_vm7 = vcmp.eq.s32.totalorder %v1107_v51, %v362_v50 }
 0x308   :  { %v718_v55 = vsel %vm370_vm7, 1.0, %v1026_v31 }
 0x309   :  { %407 = vxpose.xlu0.b32.cont [5/8] (short) %v715_v46, 128  ;;  %v668_v56 = vadd.f32 %v718_v55, %v667_v54 }
 0x30b   :  { %v669_v57 = vrot.slane %v668_v56, 4 }
 0x30d   :  { %408 = vxpose.xlu0.b32.cont [6/8] (short) %v716_v49, 128  ;;  %v670_v58 = vadd.f32 %v669_v57, %v668_v56 }
 0x30f   :  { %v671_v59 = vrot.slane %v670_v58, 2 }
 0x311   :  { %409 = vxpose.xlu0.b32.cont [7/8] (short) %v717_v53, 128  ;;  %v672_v60 = vadd.f32 %v671_v59, %v670_v58 }
 0x313   :  { %v673_v61 = vrot.slane %v672_v60, 1 }
 0x315   :  { %410 = vxpose.xlu0.b32.end [8/8] (short) %v718_v55, 128  ;;  %v674_v62 = vadd.f32 %v673_v61, %v672_v60 }
 0x317   :  { %v915_v63 = vtrunc.f32 %v674_v62 }
 0x319   :  { %v916_v1 = vcvt.f32.s32 %v915_v63 }
 0x31b   :  { %v676_v2 = vadd.s32 %v916_v1, %v661_v0 }
 0x31d   :  { %677 = vst [vmem:[#allocation8] sm:$0x1] %v676_v2 }
 0x379   :  { %v419_v7 = vpop.trf.xlu0 }
 0x37a   :  { %843 = vmatprep.mubr.msk.f32.mxu1 %vm435_vm8, %v419_v7 }
 0x37d   :  { %v420_v51 = vpop.trf.xlu0 }
 0x37e   :  { %844 = vmatmul.mubr.msk.f32.vlgmr.msra.gmra.mrb[0].mxu1 %vm435_vm8, %v420_v51 }
 0x381   :  { %v421_v28 = vpop.trf.xlu0 }
 0x382   :  { %846 = vmatprep.mubr.msk.f32.mxu1 %vm435_vm8, %v421_v28 }
 0x385   :  { %v422_v3 = vpop.trf.xlu0 }
 0x386   :  { %847 = vmatmul.mubr.msk.f32.gmra.mrb[2].mxu1 %vm435_vm8, %v422_v3 }
 0x389   :  { %v423_v4 = vpop.trf.xlu0 }
 0x38a   :  { %849 = vmatprep.mubr.msk.f32.mxu1 %vm435_vm8, %v423_v4 }
 0x38d   :  { %v424_v5 = vpop.trf.xlu0 }
 0x38e   :  { %850 = vmatmul.mubr.msk.f32.gmra.mrb[4].mxu1 %vm435_vm8, %v424_v5 }
 0x391   :  { %v425_v29 = vpop.trf.xlu0 }
 0x392   :  { %852 = vmatprep.mubr.msk.f32.mxu1 %vm435_vm8, %v425_v29 }
 0x395   :  { %v426_v30 = vpop.trf.xlu0 }
 0x396   :  { %853 = vmatmul.mubr.msk.f32.gmra.mrb[6].mxu1 %vm435_vm8, %v426_v30 }
 0x399   :  { %v427_v6 = vpop.trf.xlu0 }
 0x39a   :  { %855 = vmatprep.mubr.msk.f32.mxu1 %vm435_vm8, %v427_v6 }
 0x39d   :  { %v428_v8 = vpop.trf.xlu0 }
 0x39e   :  { %856 = vmatmul.mubr.msk.f32.gmra.mrb[8].mxu1 %vm435_vm8, %v428_v8 }
 0x3a1   :  { %v429_v11 = vpop.trf.xlu0 }
 0x3a2   :  { %858 = vmatprep.mubr.msk.f32.mxu1 %vm435_vm8, %v429_v11 }
 0x3a5   :  { %v430_v9 = vpop.trf.xlu0 }
 0x3a6   :  { %859 = vmatmul.mubr.msk.f32.gmra.mrb[10].mxu1 %vm435_vm8, %v430_v9 }
 0x3a9   :  { %v431_v10 = vpop.trf.xlu0 }
 0x3aa   :  { %861 = vmatprep.mubr.msk.f32.mxu1 %vm435_vm8, %v431_v10 }
 0x3ad   :  { %v432_v31 = vpop.trf.xlu0 }
 0x3ae   :  { %862 = vmatmul.mubr.msk.f32.gmra.mrb[12].mxu1 %vm435_vm8, %v432_v31 }
 0x3b1   :  { %v433_v32 = vpop.trf.xlu0 }
 0x3b2   :  { %864 = vmatprep.mubr.msk.f32.mxu1 %vm435_vm8, %v433_v32 }
 0x3b5   :  { %v434_v12 = vpop.trf.xlu0 }
 0x3b6   :  { %865 = vmatmul.mubr.msk.f32.gmra.mrb[14].mxu1 %vm435_vm8, %v434_v12 }
 0x3b7   :  { %980 = shalt.err (!%p977_p6)
}
 0x3b8   :  { %s981_s20 = scalar_lea.hbm %s1192_s4, 16 }
 0x3b9   :  { %p982_p7 = scmp.ne.s32.totalorder %s1192_s4, %s981_s20  ;;  %p985_p8 = scmp.lt.u32.totalorder %s981_s20, %s1192_s4 }
 0x3bb   :  { %p987_p9 = pnand %p985_p8, %p982_p7 }
 0x3bd   :  { %990 = shalt.err (!%p987_p9)
}
 0x3be   :  { %699 = dma.vmem_to_hbm [thread:$0]  %s697_s15, 16, %s1192_s4, [#allocation9]  }
 0x3bf   :  { %s1028_s4 = smov [#allocation7]  }
 0x3c0   :  { %s683_s29 = sshll.u32 %s1028_s4, 4  ;;  %s684_s29 = int_to_ptr.vmem [resolvable:$true] %s683_s29 }
 0x3c1   :  { %s991_s30 = scalar_lea.vmem %s684_s29, 2048  ;;  %p996_p11 = scmp.lt.s32.totalorder %s684_s29, %s684_s29 }
 0x3c2   :  { %p992_p10 = scmp.ne.s32.totalorder %s684_s29, %s991_s30  ;;  %p997_p12 = scmp.lt.s32.totalorder %s991_s30, %s991_s30 }
 0x3c4   :  { %p998_p13 = por %p997_p12, %p996_p11 }
 0x3c6   :  { %p999_p0 = pnand %p998_p13, %p992_p10 }
 0x451   :  { %v845_v13 = vpop.f32.mrb[0].mxu1 }
 0x452   :  { %v550_v14 = vpop.f32.mrb[1].mxu1  ;;  %646 = vst [vmem:[#allocation7 + $0x8] sm:$0xff] %v845_v13 }
 0x453   :  { %645 = vst [vmem:[#allocation7] sm:$0xff] %v550_v14 }
 0x459   :  { %v848_v15 = vpop.f32.mrb[2].mxu1 }
 0x45a   :  { %v560_v16 = vpop.f32.mrb[3].mxu1  ;;  %648 = vst [vmem:[#allocation7 + $0x18] sm:$0xff] %v848_v15 }
 0x45b   :  { %647 = vst [vmem:[#allocation7 + $0x10] sm:$0xff] %v560_v16 }
 0x461   :  { %v851_v17 = vpop.f32.mrb[4].mxu1 }
 0x462   :  { %v570_v18 = vpop.f32.mrb[5].mxu1  ;;  %650 = vst [vmem:[#allocation7 + $0x28] sm:$0xff] %v851_v17 }
 0x463   :  { %649 = vst [vmem:[#allocation7 + $0x20] sm:$0xff] %v570_v18 }
 0x469   :  { %v854_v19 = vpop.f32.mrb[6].mxu1 }
 0x46a   :  { %v580_v20 = vpop.f32.mrb[7].mxu1  ;;  %652 = vst [vmem:[#allocation7 + $0x38] sm:$0xff] %v854_v19 }
 0x46b   :  { %651 = vst [vmem:[#allocation7 + $0x30] sm:$0xff] %v580_v20 }
 0x471   :  { %v857_v21 = vpop.f32.mrb[8].mxu1 }
 0x472   :  { %v590_v22 = vpop.f32.mrb[9].mxu1  ;;  %654 = vst [vmem:[#allocation7 + $0x48] sm:$0xff] %v857_v21 }
 0x473   :  { %653 = vst [vmem:[#allocation7 + $0x40] sm:$0xff] %v590_v22 }
 0x479   :  { %v860_v23 = vpop.f32.mrb[10].mxu1 }
 0x47a   :  { %v600_v24 = vpop.f32.mrb[11].mxu1  ;;  %656 = vst [vmem:[#allocation7 + $0x58] sm:$0xff] %v860_v23 }
 0x47b   :  { %655 = vst [vmem:[#allocation7 + $0x50] sm:$0xff] %v600_v24 }
 0x481   :  { %v863_v25 = vpop.f32.mrb[12].mxu1 }
 0x482   :  { %v610_v26 = vpop.f32.mrb[13].mxu1  ;;  %658 = vst [vmem:[#allocation7 + $0x68] sm:$0xff] %v863_v25 }
 0x483   :  { %657 = vst [vmem:[#allocation7 + $0x60] sm:$0xff] %v610_v26 }
 0x489   :  { %v866_v27 = vpop.f32.mrb[14].mxu1 }
 0x48a   :  { %v620_v33 = vpop.f32.mrb[15].mxu1  ;;  %660 = vst [vmem:[#allocation7 + $0x78] sm:$0xff] %v866_v27 }
 0x48b   :  { %659 = vst [vmem:[#allocation7 + $0x70] sm:$0xff] %v620_v33 }
 0x48c   :  { %1002 = shalt.err (!%p999_p0)
}
 0x48d   :  { %s1003_s7 = scalar_lea.hbm %s1191_s3, 2048 }
 0x48e   :  { %p1004_p1 = scmp.ne.s32.totalorder %s1191_s3, %s1003_s7  ;;  %p1007_p2 = scmp.lt.u32.totalorder %s1003_s7, %s1191_s3 }
 0x490   :  { %p1009_p3 = pnand %p1007_p2, %p1004_p1 }
 0x492   :  { %1012 = shalt.err (!%p1009_p3)
}
 0x493   :  { %689 = dma.vmem_to_hbm [thread:$0]  %s684_s29, 2048, %s1191_s3, [#allocation4], %s1022_s25, %s1022_s25, %s1023_s26  }
 0x494   :  { %1017 = dma.done.wait [#allocation4], 2048  }
 0x495   :  { %1018 = vsyncadd [#allocation4], 4294965248 }
 0x496   :  { %1019 = dma.done.wait [#allocation9], 16  }
 0x497   :  { %1020 = vsyncadd [#allocation9], 4294967280 }
 0x498   :  { %706 = vsyncpa [#allocation3], 1 }
 0x499   :  { %707 = vsyncpa [#allocation6], 1 }
 0x49a   :  { %708 = vsyncpa [#allocation4], 1 }
 0x49b   :  { %709 = vsyncpa [#allocation9], 1 }

</bundles_post_ra>
